<compile_context>
chip_gen: v7x
topology: tpu7x:2x2x1
jax: 0.10.0
libtpu: 0.0.40
codegen_flags: <defaults>
</compile_context>

<pallas_src>
import functools

import jax
import jax.numpy as jnp
from jax.experimental import pallas as pl
from jax.experimental.pallas import tpu as pltpu

N_HIDDEN1 = 50
N_HIDDEN2 = 50

LANE = 128            # pad hidden feature dims to this (weights are resident, cost ~0)
SUBLANE = 8
MAX_BATCH_TILE = 2048  # rows per grid step; well under 32 MiB scoped VMEM even on v7x


def _round_up(x, m):
    return (x + m - 1) // m * m


def policy_net_kernel(x_ref, w1_ref, b1_ref, w2_ref, b2_ref, w3_ref, b3_ref, o_ref):
    # x_ref: (tb, n_in)   w1: (n_in, 128)   w2: (128, 128)   w3: (128, n_out)
    x = x_ref[...]
    # hidden1 + ReLU
    h1 = jnp.dot(x, w1_ref[...], preferred_element_type=jnp.float32) + b1_ref[...]
    h1 = jnp.maximum(h1, 0.0)
    # hidden2 + ReLU
    h2 = jnp.dot(h1, w2_ref[...], preferred_element_type=jnp.float32) + b2_ref[...]
    h2 = jnp.maximum(h2, 0.0)
    # output layer: only the real n_out classes are ever computed/stored
    logits = jnp.dot(h2, w3_ref[...], preferred_element_type=jnp.float32) + b3_ref[...]
    # numerically stable softmax over dim=1, exact divide so rows sum to 1 exactly
    m = jnp.max(logits, axis=1, keepdims=True)
    e = jnp.exp(logits - m)
    denom = jnp.sum(e, axis=1, keepdims=True)
    o_ref[...] = (e / denom).astype(o_ref.dtype)


def init_params(key, n_inputs, n_hidden1, n_hidden2, n_outputs):
    """PyTorch nn.Linear default init (uniform +-1/sqrt(fan_in)).
    Weights stored as (in_features, out_features) == W.T of the PyTorch layout."""
    ks = jax.random.split(key, 6)

    def linear(kw, kb, fan_in, fan_out):
        bound = 1.0 / jnp.sqrt(jnp.float32(fan_in))
        w = jax.random.uniform(kw, (fan_in, fan_out), jnp.float32, -bound, bound)
        b = jax.random.uniform(kb, (1, fan_out), jnp.float32, -bound, bound)
        return w, b

    w1, b1 = linear(ks[0], ks[1], n_inputs, n_hidden1)
    w2, b2 = linear(ks[2], ks[3], n_hidden1, n_hidden2)
    w3, b3 = linear(ks[4], ks[5], n_hidden2, n_outputs)
    return {"w1": w1, "b1": b1, "w2": w2, "b2": b2, "w3": w3, "b3": b3}


def prepare_params(params):
    """Zero-pad ONLY the hidden dims up to LANE (done once, outside the hot path).
    Input dim (rows of w1) and output dim (cols of w3 / b3) stay narrow."""
    def pad2(a, rows, cols):
        return jnp.pad(a, ((0, rows - a.shape[0]), (0, cols - a.shape[1])))

    w1, b1 = params["w1"], params["b1"]
    w2, b2 = params["w2"], params["b2"]
    w3, b3 = params["w3"], params["b3"]
    n_in = w1.shape[0]
    n_out = w3.shape[1]
    h1_p = _round_up(w1.shape[1], LANE)
    h2_p = _round_up(w2.shape[1], LANE)
    return {
        "w1": pad2(w1, n_in, h1_p),  "b1": pad2(b1, 1, h1_p),
        "w2": pad2(w2, h1_p, h2_p),  "b2": pad2(b2, 1, h2_p),
        "w3": pad2(w3, h2_p, n_out), "b3": b3,
        "n_inputs": n_in,
        "n_outputs": n_out,
    }


def policy_net_forward(x, pp):
    """x: (B, n_inputs) float32. pp: output of prepare_params()."""
    w1, b1 = pp["w1"], pp["b1"]
    w2, b2 = pp["w2"], pp["b2"]
    w3, b3 = pp["w3"], pp["b3"]
    n_in, n_out = pp["n_inputs"], pp["n_outputs"]
    B = x.shape[0]
    assert x.shape[1] == n_in

    # Batch tiling: 8-row aligned tiles, capped at MAX_BATCH_TILE.
    b8 = _round_up(B, SUBLANE)
    tb = min(MAX_BATCH_TILE, b8)
    # v7x has 2 TensorCores: give the "parallel" batch axis >=2 grid steps when possible
    # so both cores get work (no-op on single-TC v5e/v6e beyond ~0.35us step overhead).
    if b8 >= 2 * SUBLANE:
        tb = min(tb, _round_up((B + 1) // 2, SUBLANE))
    b_pad = _round_up(b8, tb)
    # Only materialize a padded copy of x if actually needed (at most tb-1 extra rows).
    x_p = x if b_pad == B else jnp.pad(x, ((0, b_pad - B), (0, 0)))

    grid = (b_pad // tb,)

    def resident(shape):
        # Same block (0,0) every grid step -> DMA'd once, stays in VMEM.
        return pl.BlockSpec(shape, lambda i: (0, 0))

    # Cost estimate matching what the kernel actually does (padded hidden, narrow I/O).
    h_p = w1.shape[1]
    flops = 2 * b_pad * (n_in * h_p + h_p * h_p + h_p * n_out)
    bytes_accessed = 4 * (b_pad * (n_in + n_out)
                          + w1.size + b1.size + w2.size + b2.size + w3.size + b3.size)
    cost = pl.CostEstimate(flops=flops,
                           transcendentals=b_pad * n_out,
                           bytes_accessed=bytes_accessed)

    out = pl.pallas_call(
        policy_net_kernel,
        out_shape=jax.ShapeDtypeStruct((b_pad, n_out), jnp.float32),
        grid=grid,
        in_specs=[
            pl.BlockSpec((tb, n_in), lambda i: (i, 0)),   # x streams, narrow (16 lanes)
            resident(w1.shape), resident(b1.shape),
            resident(w2.shape), resident(b2.shape),
            resident(w3.shape), resident(b3.shape),
        ],
        out_specs=pl.BlockSpec((tb, n_out), lambda i: (i, 0)),  # only real classes written
        compiler_params=pltpu.CompilerParams(
            dimension_semantics=("parallel",),
            vmem_limit_bytes=32 << 20,
        ),
        cost_estimate=cost,
    )(x_p, w1, b1, w2, b2, w3, b3)

    return out if b_pad == B else out[:B]


def reference_forward(x, p):
    h1 = jnp.maximum(x @ p["w1"] + p["b1"], 0.0)
    h2 = jnp.maximum(h1 @ p["w2"] + p["b2"], 0.0)
    logits = h2 @ p["w3"] + p["b3"]
    return jax.nn.softmax(logits, axis=1)


if __name__ == "__main__":
    key = jax.random.PRNGKey(0)
    k_x, k_x2, k_p = jax.random.split(key, 3)

    n_inputs = 16
    n_outputs = 4

    params = init_params(k_p, n_inputs, N_HIDDEN1, N_HIDDEN2, n_outputs)
    padded = prepare_params(params)

    # Case 1: sublane-aligned batch.
    batch = 8
    x = jax.random.normal(k_x, (batch, n_inputs), jnp.float32)
    out = jax.block_until_ready(policy_net_forward(x, padded))
    ref = reference_forward(x, params)
    assert out.shape == (batch, n_outputs)
    assert jnp.allclose(out, ref, atol=1e-3, rtol=1e-3)
    assert jnp.allclose(jnp.sum(out, axis=1), jnp.ones((batch,)), atol=1e-5)

    # Case 2: ragged batch (exercises the row-padding path).
    batch2 = 5
    x2 = jax.random.normal(k_x2, (batch2, n_inputs), jnp.float32)
    out2 = jax.block_until_ready(policy_net_forward(x2, padded))
    ref2 = reference_forward(x2, params)
    assert out2.shape == (batch2, n_outputs)
    assert jnp.allclose(out2, ref2, atol=1e-3, rtol=1e-3)
    assert jnp.allclose(jnp.sum(out2, axis=1), jnp.ones((batch2,)), atol=1e-5)

    print("KERNEL_OK")
</pallas_src>

<mosaic_0001>
module attributes {stable_mosaic.version = 11 : i64} {
  func.func @policy_net_kernel(%arg0: i32, %arg1: memref<8x16xf32, #tpu.memory_space<vmem>>, %arg2: memref<16x128xf32, #tpu.memory_space<vmem>>, %arg3: memref<1x128xf32, #tpu.memory_space<vmem>>, %arg4: memref<128x128xf32, #tpu.memory_space<vmem>>, %arg5: memref<1x128xf32, #tpu.memory_space<vmem>>, %arg6: memref<128x4xf32, #tpu.memory_space<vmem>>, %arg7: memref<1x4xf32, #tpu.memory_space<vmem>>, %arg8: memref<8x4xf32, #tpu.memory_space<vmem>>) attributes {dimension_semantics = [#tpu.dimension_semantics<parallel>], iteration_bounds = array<i64: 1>, scalar_prefetch = 0 : i64, scratch_operands = 0 : i64, tpu.core_type = #tpu.core_type<tc>, window_params = [{transform_indices = @transform_0, window_bounds = array<i64: 8, 16>}, {pipeline_mode = #tpu.pipeline_mode<synchronous>, transform_indices = @transform_1, window_bounds = array<i64: 16, 128>}, {pipeline_mode = #tpu.pipeline_mode<synchronous>, transform_indices = @transform_2, window_bounds = array<i64: 1, 128>}, {pipeline_mode = #tpu.pipeline_mode<synchronous>, transform_indices = @transform_3, window_bounds = array<i64: 128, 128>}, {pipeline_mode = #tpu.pipeline_mode<synchronous>, transform_indices = @transform_4, window_bounds = array<i64: 1, 128>}, {pipeline_mode = #tpu.pipeline_mode<synchronous>, transform_indices = @transform_5, window_bounds = array<i64: 128, 4>}, {pipeline_mode = #tpu.pipeline_mode<synchronous>, transform_indices = @transform_6, window_bounds = array<i64: 1, 4>}, {transform_indices = @transform_7, window_bounds = array<i64: 8, 4>}]} {
    %c0 = arith.constant 0 : index
    %c0_0 = arith.constant 0 : index
    %0 = vector.load %arg1[%c0, %c0_0] : memref<8x16xf32, #tpu.memory_space<vmem>>, vector<8x16xf32>
    %c0_1 = arith.constant 0 : index
    %c0_2 = arith.constant 0 : index
    %1 = vector.load %arg2[%c0_1, %c0_2] : memref<16x128xf32, #tpu.memory_space<vmem>>, vector<16x128xf32>
    %cst = arith.constant dense<0.000000e+00> : vector<8x128xf32>
    %2 = tpu.matmul %0, %1, %cst {dimension_numbers = #tpu.dot_dimension_numbers<[1], [0], [0], [1], [0, 0, 1, 1], [], []>} : vector<8x16xf32>, vector<16x128xf32>, vector<8x128xf32> -> vector<8x128xf32>
    %c0_3 = arith.constant 0 : index
    %c0_4 = arith.constant 0 : index
    %3 = vector.load %arg3[%c0_3, %c0_4] : memref<1x128xf32, #tpu.memory_space<vmem>>, vector<1x128xf32>
    %4 = vector.broadcast %3 : vector<1x128xf32> to vector<8x128xf32>
    %5 = arith.addf %2, %4 : vector<8x128xf32>
    %cst_5 = arith.constant 0.000000e+00 : f32
    %6 = vector.broadcast %cst_5 : f32 to vector<8x128xf32>
    %7 = arith.maximumf %5, %6 : vector<8x128xf32>
    %c0_6 = arith.constant 0 : index
    %c0_7 = arith.constant 0 : index
    %8 = vector.load %arg4[%c0_6, %c0_7] : memref<128x128xf32, #tpu.memory_space<vmem>>, vector<128x128xf32>
    %cst_8 = arith.constant dense<0.000000e+00> : vector<8x128xf32>
    %9 = tpu.matmul %7, %8, %cst_8 {dimension_numbers = #tpu.dot_dimension_numbers<[1], [0], [0], [1], [0, 0, 1, 1], [], []>} : vector<8x128xf32>, vector<128x128xf32>, vector<8x128xf32> -> vector<8x128xf32>
    %c0_9 = arith.constant 0 : index
    %c0_10 = arith.constant 0 : index
    %10 = vector.load %arg5[%c0_9, %c0_10] : memref<1x128xf32, #tpu.memory_space<vmem>>, vector<1x128xf32>
    %11 = vector.broadcast %10 : vector<1x128xf32> to vector<8x128xf32>
    %12 = arith.addf %9, %11 : vector<8x128xf32>
    %cst_11 = arith.constant 0.000000e+00 : f32
    %13 = vector.broadcast %cst_11 : f32 to vector<8x128xf32>
    %14 = arith.maximumf %12, %13 : vector<8x128xf32>
    %c0_12 = arith.constant 0 : index
    %c0_13 = arith.constant 0 : index
    %15 = vector.load %arg6[%c0_12, %c0_13] : memref<128x4xf32, #tpu.memory_space<vmem>>, vector<128x4xf32>
    %cst_14 = arith.constant dense<0.000000e+00> : vector<8x4xf32>
    %16 = tpu.matmul %14, %15, %cst_14 {dimension_numbers = #tpu.dot_dimension_numbers<[1], [0], [0], [1], [0, 0, 1, 1], [], []>} : vector<8x128xf32>, vector<128x4xf32>, vector<8x4xf32> -> vector<8x4xf32>
    %c0_15 = arith.constant 0 : index
    %c0_16 = arith.constant 0 : index
    %17 = vector.load %arg7[%c0_15, %c0_16] : memref<1x4xf32, #tpu.memory_space<vmem>>, vector<1x4xf32>
    %18 = vector.broadcast %17 : vector<1x4xf32> to vector<8x4xf32>
    %19 = arith.addf %16, %18 : vector<8x4xf32>
    %cst_17 = arith.constant dense<0xFF800000> : vector<8xf32>
    %20 = vector.multi_reduction <maximumf>, %19, %cst_17 [1] : vector<8x4xf32> to vector<8xf32>
    %21 = vector.shape_cast %20 : vector<8xf32> to vector<8x1xf32>
    %22 = vector.broadcast %21 : vector<8x1xf32> to vector<8x4xf32>
    %23 = arith.subf %19, %22 : vector<8x4xf32>
    %24 = math.exp %23 : vector<8x4xf32>
    %cst_18 = arith.constant dense<0.000000e+00> : vector<8xf32>
    %25 = vector.multi_reduction <add>, %24, %cst_18 [1] : vector<8x4xf32> to vector<8xf32>
    %26 = vector.shape_cast %25 : vector<8xf32> to vector<8x1xf32>
    %27 = vector.broadcast %26 : vector<8x1xf32> to vector<8x4xf32>
    %28 = arith.divf %24, %27 : vector<8x4xf32>
    %c0_19 = arith.constant 0 : index
    %c0_20 = arith.constant 0 : index
    %29 = vector.load %arg8[%c0_19, %c0_20] : memref<8x4xf32, #tpu.memory_space<vmem>>, vector<8x4xf32>
    tpu.vector_store %arg8[%c0_19, %c0_20], %28 {strides = array<i32>} : memref<8x4xf32, #tpu.memory_space<vmem>>, vector<8x4xf32>,
    return
  }
  func.func @transform_0(%arg0: i32) -> (i32, i32) {
    %c0_i32 = arith.constant 0 : i32
    %c0_i32_0 = arith.constant 0 : i32
    return %arg0, %c0_i32 : i32, i32
  }
  func.func @transform_1(%arg0: i32) -> (i32, i32) {
    %c0_i32 = arith.constant 0 : i32
    %c0_i32_0 = arith.constant 0 : i32
    %c0_i32_1 = arith.constant 0 : i32
    return %c0_i32, %c0_i32_0 : i32, i32
  }
  func.func @transform_2(%arg0: i32) -> (i32, i32) {
    %c0_i32 = arith.constant 0 : i32
    %c0_i32_0 = arith.constant 0 : i32
    %c0_i32_1 = arith.constant 0 : i32
    return %c0_i32, %c0_i32_0 : i32, i32
  }
  func.func @transform_3(%arg0: i32) -> (i32, i32) {
    %c0_i32 = arith.constant 0 : i32
    %c0_i32_0 = arith.constant 0 : i32
    %c0_i32_1 = arith.constant 0 : i32
    return %c0_i32, %c0_i32_0 : i32, i32
  }
  func.func @transform_4(%arg0: i32) -> (i32, i32) {
    %c0_i32 = arith.constant 0 : i32
    %c0_i32_0 = arith.constant 0 : i32
    %c0_i32_1 = arith.constant 0 : i32
    return %c0_i32, %c0_i32_0 : i32, i32
  }
  func.func @transform_5(%arg0: i32) -> (i32, i32) {
    %c0_i32 = arith.constant 0 : i32
    %c0_i32_0 = arith.constant 0 : i32
    %c0_i32_1 = arith.constant 0 : i32
    return %c0_i32, %c0_i32_0 : i32, i32
  }
  func.func @transform_6(%arg0: i32) -> (i32, i32) {
    %c0_i32 = arith.constant 0 : i32
    %c0_i32_0 = arith.constant 0 : i32
    %c0_i32_1 = arith.constant 0 : i32
    return %c0_i32, %c0_i32_0 : i32, i32
  }
  func.func @transform_7(%arg0: i32) -> (i32, i32) {
    %c0_i32 = arith.constant 0 : i32
    %c0_i32_0 = arith.constant 0 : i32
    return %arg0, %c0_i32 : i32, i32
  }
}

</mosaic_0001>

<bundles_post_ra>
// kernel: tpu_custom_call.1
= control target key start
LH: loop header
LB: loop body
LE: loop exit
PB: predicated region body
PF: predicated region fallthrough
CT: control target
= control target key end

     0   :  { %12 = vsyncpa [#allocation3], 0  ;;  %s533_s24 = smov [#allocation2]   ;;  %s725_s0 = inlined_call_operand.vmem [shape: f32[8,16], index: 0, kind: input, shape index: {}]   ;;  %s726_s1 = inlined_call_operand.hbm [shape: f32[16,128], index: 1, kind: input, shape index: {}]   ;;  %s727_s2 = inlined_call_operand.vmem [shape: f32[1,128], index: 2, kind: input, shape index: {}]   ;;  %s728_s3 = inlined_call_operand.vmem [shape: f32[128,128], index: 3, kind: input, shape index: {}]   ;;  %s729_s4 = inlined_call_operand.vmem [shape: f32[1,128], index: 4, kind: input, shape index: {}]   ;;  %s730_s5 = inlined_call_operand.vmem [shape: f32[128,4], index: 5, kind: input, shape index: {}]   ;;  %s731_s6 = inlined_call_operand.vmem [shape: f32[1,4], index: 6, kind: input, shape index: {}]   ;;  %s732_s7 = inlined_call_operand.vmem [shape: f32[8,4], index: 7, kind: output, shape index: {}]  }
   0x1   :  { %s20_s25 = sshll.u32 %s533_s24, 4  ;;  %s509_s28 = scalar_lea.hbm %s726_s1, 256  ;;  %s21_s25 = int_to_ptr.vmem [resolvable:$true] %s20_s25 }
   0x2   :  { %p510_p0 = scmp.ne.s32.totalorder %s726_s1, %s509_s28  ;;  %p513_p1 = scmp.lt.u32.totalorder %s509_s28, %s726_s1 }
   0x4   :  { %p515_p2 = pnand %p513_p1, %p510_p0 }
   0x6   :  { %518 = shalt.err (!%p515_p2)
}
   0x7   :  { %s519_s10 = scalar_lea.vmem %s21_s25, 256  ;;  %p524_p4 = scmp.lt.s32.totalorder %s21_s25, %s21_s25 }
   0x8   :  { %p520_p3 = scmp.ne.s32.totalorder %s21_s25, %s519_s10  ;;  %p525_p5 = scmp.lt.s32.totalorder %s519_s10, %s519_s10 }
   0xa   :  { %p526_p6 = por %p525_p5, %p524_p4 }
   0xc   :  { %p527_p7 = pnand %p526_p6, %p520_p3 }
   0xe   :  { %530 = shalt.err (!%p527_p7)
}
   0xf   :  { %s534_s11 = smov 128   ;;  %s535_s12 = smov 8  }
  0x10   :  { %26 = dma.hbm_to_vmem [thread:$0]  %s726_s1, 256, %s21_s25, [#allocation3], %s534_s11, %s534_s11, %s535_s12  }
  0x11   :  { %531 = dma.done.wait [#allocation3], 256  }
  0x12   :  { %532 = vsyncadd [#allocation3], 4294967040  ;;  %v536_v0 = vmov 0.0|0.0   ;;  %vm537_vm0 = vmmov 0   ;;  %v538_v1 = vmov 0.0   ;;  %v41_v2 = vld [vmem:[#allocation2] sm:$0xff] }
  0x13   :  { %448 = vmatprep.subr.bf16.mxu0 %v536_v0  ;;  %375 = vmatprep.mubr.msk.f32.mxu0 %vm537_vm0, %v538_v1  ;;  %v42_v3 = vld [vmem:[#allocation2 + $0x8] sm:$0xff]  ;;  %v125_v5 = vld [vmem:[%s728_s3] sm:$0xff]  ;;  %v127_v7 = vld [vmem:[%s728_s3 + $0x10] sm:$0xff]  ;;  %vm50_vm1 = vcmask 130048   ;;  %vm312_vm2 = vcmask 31744  }
  0x14   :  { %451 = vmatprep.subr.bf16.mxu1 %v536_v0  ;;  %410 = vmatprep.mubr.msk.f32.mxu1 %vm537_vm0, %v538_v1  ;;  %v449_v4 = vpack.c.bf16 %v42_v3, %v41_v2  ;;  %v126_v6 = vld [vmem:[%s728_s3 + $0x8] sm:$0xff]  ;;  %v128_v9 = vld [vmem:[%s728_s3 + $0x18] sm:$0xff]  ;;  %v40_v10 = vld [vmem:[%s725_s0] sm:$0xff] }
  0x15   :  { %v452_v8 = vpack.c.bf16 %v126_v6, %v125_v5  ;;  %v455_v11 = vpack.c.bf16 %v128_v9, %v127_v7  ;;  %v129_v12 = vld [vmem:[%s728_s3 + $0x20] sm:$0xff]  ;;  %v130_v13 = vld [vmem:[%s728_s3 + $0x28] sm:$0xff]  ;;  %v131_v15 = vld [vmem:[%s728_s3 + $0x30] sm:$0xff] }
  0x16   :  { %450 = vmatpush3.bf16.msra.mxu0 %v449_v4  ;;  %v458_v14 = vpack.c.bf16 %v130_v13, %v129_v12  ;;  %v132_v16 = vld [vmem:[%s728_s3 + $0x38] sm:$0xff]  ;;  %v133_v18 = vld [vmem:[%s728_s3 + $0x40] sm:$0xff]  ;;  %v134_v19 = vld [vmem:[%s728_s3 + $0x48] sm:$0xff] }
  0x17   :  { %453 = vmatpush3.bf16.msra.mxu1 %v452_v8  ;;  %475 = vmatprep.subr.bf16.mxu0 %v536_v0  ;;  %v461_v17 = vpack.c.bf16 %v132_v16, %v131_v15  ;;  %v464_v20 = vpack.c.bf16 %v134_v19, %v133_v18  ;;  %v135_v21 = vld [vmem:[%s728_s3 + $0x50] sm:$0xff]  ;;  %v136_v22 = vld [vmem:[%s728_s3 + $0x58] sm:$0xff]  ;;  %v137_v24 = vld [vmem:[%s728_s3 + $0x60] sm:$0xff] }
  0x18   :  { %454 = vmatprep.subr.bf16.mxu1 %v536_v0  ;;  %v467_v23 = vpack.c.bf16 %v136_v22, %v135_v21  ;;  %v138_v25 = vld [vmem:[%s728_s3 + $0x68] sm:$0xff]  ;;  %v139_v27 = vld [vmem:[%s728_s3 + $0x70] sm:$0xff]  ;;  %v140_v28 = vld [vmem:[%s728_s3 + $0x78] sm:$0xff] }
  0x19   :  { %376 = vmatmul.mubr.msk.f32.vlgmr.msra.gmra.mrb[0].mxu0 %vm50_vm1, %v40_v10  ;;  %v470_v26 = vpack.c.bf16 %v138_v25, %v137_v24  ;;  %v473_v29 = vpack.c.bf16 %v140_v28, %v139_v27  ;;  %v219_v30 = vld [vmem:[%s730_s5] sm:$0xff]  ;;  %v220_v31 = vld [vmem:[%s730_s5 + $0x8] sm:$0xff]  ;;  %v221_v32 = vld [vmem:[%s730_s5 + $0x10] sm:$0xff] }
  0x1a   :  { %445 = vmatprep.mubr.msk.f32.mxu0 %vm537_vm0, %v538_v1  ;;  %v476_v33 = vpack.c.bf16 %v220_v31, %v219_v30  ;;  %v222_v34 = vld [vmem:[%s730_s5 + $0x18] sm:$0xff]  ;;  %v223_v36 = vld [vmem:[%s730_s5 + $0x20] sm:$0xff]  ;;  %v224_v37 = vld [vmem:[%s730_s5 + $0x28] sm:$0xff] }
  0x1b   :  { %456 = vmatpush3.bf16.msra.mxu1 %v455_v11  ;;  %v479_v35 = vpack.c.bf16 %v222_v34, %v221_v32  ;;  %v482_v38 = vpack.c.bf16 %v224_v37, %v223_v36  ;;  %v225_v39 = vld [vmem:[%s730_s5 + $0x30] sm:$0xff]  ;;  %v226_v40 = vld [vmem:[%s730_s5 + $0x38] sm:$0xff]  ;;  %v227_v42 = vld [vmem:[%s730_s5 + $0x40] sm:$0xff] }
  0x1c   :  { %457 = vmatprep.subr.bf16.mxu1 %v536_v0  ;;  %477 = vmatpush3.bf16.msra.mxu0 %v476_v33  ;;  %v485_v41 = vpack.c.bf16 %v226_v40, %v225_v39  ;;  %v228_v43 = vld [vmem:[%s730_s5 + $0x48] sm:$0xff]  ;;  %v229_v45 = vld [vmem:[%s730_s5 + $0x50] sm:$0xff]  ;;  %v230_v46 = vld [vmem:[%s730_s5 + $0x58] sm:$0xff] }
  0x1d   :  { %478 = vmatprep.subr.bf16.mxu0 %v536_v0  ;;  %v488_v44 = vpack.c.bf16 %v228_v43, %v227_v42  ;;  %v491_v47 = vpack.c.bf16 %v230_v46, %v229_v45  ;;  %v231_v48 = vld [vmem:[%s730_s5 + $0x60] sm:$0xff]  ;;  %v232_v49 = vld [vmem:[%s730_s5 + $0x68] sm:$0xff]  ;;  %v233_v56 = vld [vmem:[%s730_s5 + $0x70] sm:$0xff] }
  0x1e   :  { %v494_v50 = vpack.c.bf16 %v232_v49, %v231_v48  ;;  %v330_v51 = vld [vmem:[%s727_s2] ss:$0 sm:$0xff]  ;;  %v234_v57 = vld [vmem:[%s730_s5 + $0x78] sm:$0xff] }
  0x1f   :  { %459 = vmatpush3.bf16.msra.mxu1 %v458_v14  ;;  %v497_v58 = vpack.c.bf16 %v234_v57, %v233_v56  ;;  %v332_v59 = vld [vmem:[%s729_s4] ss:$0 sm:$0xff] }
  0x20   :  { %460 = vmatprep.subr.bf16.mxu1 %v536_v0  ;;  %480 = vmatpush3.bf16.msra.mxu0 %v479_v35 }
  0x21   :  { %481 = vmatprep.subr.bf16.mxu0 %v536_v0 }
  0x23   :  { %462 = vmatpush3.bf16.msra.mxu1 %v461_v17 }
  0x24   :  { %463 = vmatprep.subr.bf16.mxu1 %v536_v0  ;;  %483 = vmatpush3.bf16.msra.mxu0 %v482_v38 }
  0x25   :  { %484 = vmatprep.subr.bf16.mxu0 %v536_v0 }
  0x27   :  { %465 = vmatpush3.bf16.msra.mxu1 %v464_v20 }
  0x28   :  { %466 = vmatprep.subr.bf16.mxu1 %v536_v0  ;;  %486 = vmatpush3.bf16.msra.mxu0 %v485_v41 }
  0x29   :  { %487 = vmatprep.subr.bf16.mxu0 %v536_v0 }
  0x2b   :  { %468 = vmatpush3.bf16.msra.mxu1 %v467_v23 }
  0x2c   :  { %469 = vmatprep.subr.bf16.mxu1 %v536_v0  ;;  %489 = vmatpush3.bf16.msra.mxu0 %v488_v44 }
  0x2d   :  { %490 = vmatprep.subr.bf16.mxu0 %v536_v0 }
  0x2f   :  { %471 = vmatpush3.bf16.msra.mxu1 %v470_v26 }
  0x30   :  { %472 = vmatprep.subr.bf16.mxu1 %v536_v0  ;;  %492 = vmatpush3.bf16.msra.mxu0 %v491_v47 }
  0x31   :  { %493 = vmatprep.subr.bf16.mxu0 %v536_v0 }
  0x33   :  { %474 = vmatpush3.bf16.msra.mxu1 %v473_v29 }
  0x34   :  { %495 = vmatpush3.bf16.msra.mxu0 %v494_v50 }
  0x35   :  { %496 = vmatprep.subr.bf16.mxu0 %v536_v0  ;;  %v333_v0 = vld [vmem:[%s731_s6] ss:$0 sm:$0xff] }
  0x38   :  { %498 = vmatpush3.bf16.msra.mxu0 %v497_v58 }
  0xec   :  { %v120_v52 = vpop.f32.mrb[0].mxu0 }
  0xed   :  { %v121_v53 = vadd.f32 %v330_v51, %v120_v52  ;;  %v377_v54 = vpop.f32.mrb[1].mxu0 }
  0xef   :  { %v124_v55 = vmax.f32 %v121_v53, 0.0 }
  0xf1   :  { %411 = vmatmul.mubr.f32.vlgmr.msra.gmra.mrb[0].mxu1 %v124_v55 }
 0x1c4   :  { %v214_v60 = vpop.f32.mrb[0].mxu1 }
 0x1c5   :  { %v215_v61 = vadd.f32 %v332_v59, %v214_v60  ;;  %v412_v62 = vpop.f32.mrb[1].mxu1 }
 0x1c7   :  { %v218_v63 = vmax.f32 %v215_v61, 0.0 }
 0x1c9   :  { %446 = vmatmul.mubr.f32.vlgmr.msra.gmra.mrb[2].mxu0 %v218_v63 }
 0x29c   :  { %v308_v1 = vpop.f32.mrb[2].mxu0 }
 0x29d   :  { %v309_v2 = vadd.f32 %v333_v0, %v308_v1  ;;  %v447_v3 = vpop.f32.mrb[3].mxu0 }
 0x29f   :  { %v313_v4 = vsel %vm312_vm2, %v309_v2, -inf }
 0x2a0   :  { %314 = vmax.xlane.f32.xlu0 %v313_v4 }
 0x32d   :  { %v315_v5 = vpop.xlane.xlu0 %314 }
 0x32e   :  { %v316_v6 = vsub.f32 %v309_v2, %v315_v5 }
 0x330   :  { %v317_v7 = vmul.f32 1.442695, %v316_v6 }
 0x332   :  { %505 = vpow2.f32 %v317_v7 }
 0x33c   :  { %v506_v8 = vpop.eup %505 }
 0x33d   :  { %v319_v9 = vsel %vm312_vm2, %v506_v8, 0.0 }
 0x33e   :  { %320 = vadd.xlane.f32.xlu0 %v319_v9 }
 0x3cb   :  { %v321_v10 = vpop.xlane.xlu0 %320 }
 0x3cc   :  { %507 = vrcp.f32 %v321_v10 }
 0x3d6   :  { %v508_v11 = vpop.eup %507 }
 0x3d7   :  { %v323_v12 = vmul.f32 %v508_v11, %v506_v8 }
 0x3d9   :  { %324 = vst.msk [vmem:[%s732_s7] sm:$0xff] %vm312_vm2, %v323_v12 }
 0x3da   :  { %329 = vsyncpa [#allocation3], 1 }

</bundles_post_ra>
